<compile_context>
chip_gen: v5e
topology: v5e:2x2
jax: 0.10.0
libtpu: 0.0.40
codegen_flags: <defaults>
</compile_context>

<pallas_src>
import functools

import jax
import jax.numpy as jnp
from jax.experimental import pallas as pl
from jax.experimental.pallas import tpu as pltpu


def _round_up(v, m):
    return ((v + m - 1) // m) * m


def _mlp_kernel(x_ref, p_ref, out_ref, *, layer_dims):
    """Fused MLP on one batch tile; batch is the lane (last) axis.

    x_ref   : (in_size, batch_tile)              compute dtype
    p_ref   : (n_layers, max_fout, max_fin + 1)  float32 packed params
              generic layer        : p[l, :f_out, :f_in] = W_l^T ; p[l, :f_out, -1] = b_l
              last layer, f_out==1 : p[l, :f_in, 0]      = W_l   ; p[l, 0, -1]      = b_l
    out_ref : (out_size, batch_tile)             float32 (lane-dense store)
    """
    n_layers = len(layer_dims)
    h = x_ref[...].astype(jnp.float32)            # all elementwise math in f32
    for li, (f_in, f_out) in enumerate(layer_dims):
        p = p_ref[li]                             # (max_fout, max_fin + 1)
        is_last = li == n_layers - 1
        if is_last and f_out == 1:
            # Single-output layer: broadcast multiply + feature-axis reduce
            # (VPU/XLU) instead of a (1 x f_in) MXU matmul.
            w_col = p[:f_in, 0:1]                 # (f_in, 1)
            b = p[0:1, -1:]                       # (1, 1)
            z = jnp.sum(w_col * h, axis=0, keepdims=True) + b
        else:
            w = p[:f_out, :f_in]                  # (f_out, f_in)
            b = p[:f_out, -1:]                    # (f_out, 1)
            z = jnp.dot(w, h, preferred_element_type=jnp.float32) + b
        h = jax.nn.sigmoid(z) if is_last else jnp.maximum(z, 0.0)
    out_ref[...] = h.astype(out_ref.dtype)


def lj8_3_forward(x, params, *, target_batch_tile=1024,
                  compute_dtype=jnp.float32, vmem_limit_bytes=None):
    """LJ8_3 MLP forward pass as a single fused Pallas kernel.

    Args:
      x: (B, in_size) float32 array.
      params: list of (W, b); W has shape (in_features, out_features)
              (transposed vs. PyTorch nn.Linear), b has shape (out_features,).
      target_batch_tile: upper bound on rows per grid step (multiple of 128).
      compute_dtype: storage dtype for the x DMA (f32 default; bf16 halves the
              only real HBM read for very large batches).  All in-kernel math
              is float32 regardless.
      vmem_limit_bytes: optional explicit VMEM budget.
    Returns:
      (B, out_size) float32 array in (0, 1).
    """
    B, in_size = x.shape
    n_layers = len(params)
    layer_dims = tuple((int(w.shape[0]), int(w.shape[1])) for w, _ in params)
    assert layer_dims[0][0] == in_size
    out_size = layer_dims[-1][1]
    max_fout = max(fo for _, fo in layer_dims)
    max_fin = max(fi for fi, _ in layer_dims)
    assert target_batch_tile % 128 == 0

    # --- batch tiling: pad only to 128, size the tile to the data ------------
    padded_B = _round_up(B, 128)
    if padded_B <= target_batch_tile:
        n_tiles, batch_tile = 1, padded_B
    else:
        n_tiles = pl.cdiv(padded_B, target_batch_tile)
        if n_tiles % 2:                 # even step count keeps both v7x TCs busy
            n_tiles += 1
        batch_tile = _round_up(pl.cdiv(padded_B, n_tiles), 128)
    padded_B = n_tiles * batch_tile

    # Transposed layout: batch on the lane axis.
    xt = x.T.astype(compute_dtype)
    if padded_B != B:
        xt = jnp.pad(xt, ((0, 0), (0, padded_B - B)))

    # Pack all weights + biases into a single blob (see _mlp_kernel docstring).
    blob = jnp.zeros((n_layers, max_fout, max_fin + 1), jnp.float32)
    for li, (w, b) in enumerate(params):
        f_in, f_out = layer_dims[li]
        wf = w.astype(jnp.float32)
        bf = b.astype(jnp.float32)
        if li == n_layers - 1 and f_out == 1:
            blob = blob.at[li, :f_in, 0:1].set(wf)          # column layout
            blob = blob.at[li, 0, max_fin].set(bf[0])
        else:
            blob = blob.at[li, :f_out, :f_in].set(wf.T)     # (f_out, f_in)
            blob = blob.at[li, :f_out, max_fin].set(bf)

    in_specs = [
        pl.BlockSpec((in_size, batch_tile), lambda i: (0, i)),
        pl.BlockSpec((n_layers, max_fout, max_fin + 1), lambda i: (0, 0, 0)),
    ]
    out_spec = pl.BlockSpec((out_size, batch_tile), lambda i: (0, i))

    # Raise the scoped-VMEM limit only if the lane/sublane-padded working set
    # needs it; cap at 48 MiB for headroom on v7x's 64 MiB VMEM.
    if vmem_limit_bytes is None:
        def padded_bytes(shape, dtype):
            s = list(shape)
            s[-1] = _round_up(s[-1], 128)
            if len(s) >= 2:
                s[-2] = _round_up(s[-2], 8)
            n = 1
            for d in s:
                n *= int(d)
            return n * jnp.dtype(dtype).itemsize

        est = (2 * padded_bytes((in_size, batch_tile), compute_dtype)
               + 2 * padded_bytes((n_layers, max_fout, max_fin + 1), jnp.float32)
               + 2 * padded_bytes((out_size, batch_tile), jnp.float32)
               + 4 * padded_bytes((max_fout, batch_tile), jnp.float32))
        if est > 24 * 1024 * 1024:
            vmem_limit_bytes = min(2 * est, 48 * 1024 * 1024)

    out_t = pl.pallas_call(
        functools.partial(_mlp_kernel, layer_dims=layer_dims),
        out_shape=jax.ShapeDtypeStruct((out_size, padded_B), jnp.float32),
        grid_spec=pltpu.PrefetchScalarGridSpec(
            num_scalar_prefetch=0,
            grid=(n_tiles,),
            in_specs=in_specs,
            out_specs=out_spec,
        ),
        compiler_params=pltpu.CompilerParams(
            dimension_semantics=("parallel",),    # batch tiles shard across TCs
            vmem_limit_bytes=vmem_limit_bytes,
        ),
    )(xt, blob)

    return out_t.T[:B]


def init_params(key, in_size, hidden_sizes, out_size):
    """Deterministic init matching PyTorch nn.Linear default:
    U(-1/sqrt(fan_in), 1/sqrt(fan_in)) for both weights and biases."""
    sizes = [in_size] + list(hidden_sizes) + [out_size]
    params = []
    for fan_in, fan_out in zip(sizes[:-1], sizes[1:]):
        key, kw, kb = jax.random.split(key, 3)
        bound = 1.0 / (fan_in ** 0.5)
        w = jax.random.uniform(kw, (fan_in, fan_out), jnp.float32, -bound, bound)
        b = jax.random.uniform(kb, (fan_out,), jnp.float32, -bound, bound)
        params.append((w, b))
    return params


def reference_forward(x, params):
    """Pure-f32 JAX reference."""
    h = x
    for i, (w, b) in enumerate(params):
        h = h @ w + b
        if i < len(params) - 1:
            h = jnp.maximum(h, 0.0)
        else:
            h = jax.nn.sigmoid(h)
    return h


if __name__ == "__main__":
    # LJ8 in 3D -> 8 particles * 3 coords = 24 input features.
    in_size = 24
    hidden_sizes = [32, 32]
    out_size = 1

    key = jax.random.PRNGKey(0)
    kx, kp = jax.random.split(key)
    params = init_params(kp, in_size, hidden_sizes, out_size)

    # Case 1: odd batch -> single 384-wide tile (padding only to 128-multiple).
    x1 = jax.random.normal(kx, (300, in_size), jnp.float32)
    out1 = jax.block_until_ready(lj8_3_forward(x1, params))
    assert out1.shape == (300, out_size)
    ref1 = reference_forward(x1, params)
    assert jnp.allclose(out1, ref1, atol=5e-3, rtol=1e-3), "mismatch (case 1)"

    # Case 2: multi-tile grid with an even number of steps.
    x2 = jax.random.normal(jax.random.PRNGKey(1), (1000, in_size), jnp.float32)
    out2 = jax.block_until_ready(
        lj8_3_forward(x2, params, target_batch_tile=256))
    assert out2.shape == (1000, out_size)
    ref2 = reference_forward(x2, params)
    assert jnp.allclose(out2, ref2, atol=5e-3, rtol=1e-3), "mismatch (case 2)"

    print("KERNEL_OK")
</pallas_src>

<mosaic_0001>
module attributes {stable_mosaic.version = 11 : i64} {
  func.func @_mlp_kernel(%arg0: i32, %arg1: memref<24x384xf32, #tpu.memory_space<vmem>>, %arg2: memref<3x32x33xf32, #tpu.memory_space<vmem>>, %arg3: memref<1x384xf32, #tpu.memory_space<vmem>>) attributes {dimension_semantics = [#tpu.dimension_semantics<parallel>], iteration_bounds = array<i64: 1>, scalar_prefetch = 0 : i64, scratch_operands = 0 : i64, tpu.core_type = #tpu.core_type<tc>, window_params = [{transform_indices = @transform_0, window_bounds = array<i64: 24, 384>}, {pipeline_mode = #tpu.pipeline_mode<synchronous>, transform_indices = @transform_1, window_bounds = array<i64: 3, 32, 33>}, {transform_indices = @transform_2, window_bounds = array<i64: 1, 384>}]} {
    %c0 = arith.constant 0 : index
    %c0_0 = arith.constant 0 : index
    %0 = vector.load %arg1[%c0, %c0_0] : memref<24x384xf32, #tpu.memory_space<vmem>>, vector<24x384xf32>
    %c0_1 = arith.constant 0 : index
    %c0_2 = arith.constant 0 : index
    %c0_3 = arith.constant 0 : index
    %1 = vector.load %arg2[%c0_1, %c0_2, %c0_3] : memref<3x32x33xf32, #tpu.memory_space<vmem>>, vector<1x32x33xf32>
    %2 = vector.shape_cast %1 : vector<1x32x33xf32> to vector<32x33xf32>
    %3 = vector.extract_strided_slice %2 {offsets = [0, 0], sizes = [32, 24], strides = [1, 1]} : vector<32x33xf32> to vector<32x24xf32>
    %4 = vector.extract_strided_slice %2 {offsets = [0, 32], sizes = [32, 1], strides = [1, 1]} : vector<32x33xf32> to vector<32x1xf32>
    %cst = arith.constant dense<0.000000e+00> : vector<32x384xf32>
    %5 = tpu.matmul %3, %0, %cst {dimension_numbers = #tpu.dot_dimension_numbers<[1], [0], [0], [1], [0, 0, 1, 1], [], []>} : vector<32x24xf32>, vector<24x384xf32>, vector<32x384xf32> -> vector<32x384xf32>
    %6 = vector.broadcast %4 : vector<32x1xf32> to vector<32x384xf32>
    %7 = arith.addf %5, %6 : vector<32x384xf32>
    %cst_4 = arith.constant 0.000000e+00 : f32
    %8 = vector.broadcast %cst_4 : f32 to vector<32x384xf32>
    %9 = arith.maximumf %7, %8 : vector<32x384xf32>
    %c1 = arith.constant 1 : index
    %c0_5 = arith.constant 0 : index
    %c0_6 = arith.constant 0 : index
    %10 = vector.load %arg2[%c1, %c0_5, %c0_6] : memref<3x32x33xf32, #tpu.memory_space<vmem>>, vector<1x32x33xf32>
    %11 = vector.shape_cast %10 : vector<1x32x33xf32> to vector<32x33xf32>
    %12 = vector.extract_strided_slice %11 {offsets = [0, 0], sizes = [32, 32], strides = [1, 1]} : vector<32x33xf32> to vector<32x32xf32>
    %13 = vector.extract_strided_slice %11 {offsets = [0, 32], sizes = [32, 1], strides = [1, 1]} : vector<32x33xf32> to vector<32x1xf32>
    %cst_7 = arith.constant dense<0.000000e+00> : vector<32x384xf32>
    %14 = tpu.matmul %12, %9, %cst_7 {dimension_numbers = #tpu.dot_dimension_numbers<[1], [0], [0], [1], [0, 0, 1, 1], [], []>} : vector<32x32xf32>, vector<32x384xf32>, vector<32x384xf32> -> vector<32x384xf32>
    %15 = vector.broadcast %13 : vector<32x1xf32> to vector<32x384xf32>
    %16 = arith.addf %14, %15 : vector<32x384xf32>
    %cst_8 = arith.constant 0.000000e+00 : f32
    %17 = vector.broadcast %cst_8 : f32 to vector<32x384xf32>
    %18 = arith.maximumf %16, %17 : vector<32x384xf32>
    %c2 = arith.constant 2 : index
    %c0_9 = arith.constant 0 : index
    %c0_10 = arith.constant 0 : index
    %19 = vector.load %arg2[%c2, %c0_9, %c0_10] : memref<3x32x33xf32, #tpu.memory_space<vmem>>, vector<1x32x33xf32>
    %20 = vector.shape_cast %19 : vector<1x32x33xf32> to vector<32x33xf32>
    %21 = vector.extract_strided_slice %20 {offsets = [0, 0], sizes = [32, 1], strides = [1, 1]} : vector<32x33xf32> to vector<32x1xf32>
    %22 = vector.extract_strided_slice %20 {offsets = [0, 32], sizes = [1, 1], strides = [1, 1]} : vector<32x33xf32> to vector<1x1xf32>
    %23 = vector.broadcast %21 : vector<32x1xf32> to vector<32x384xf32>
    %24 = arith.mulf %23, %18 : vector<32x384xf32>
    %cst_11 = arith.constant dense<0.000000e+00> : vector<384xf32>
    %25 = vector.multi_reduction <add>, %24, %cst_11 [0] : vector<32x384xf32> to vector<384xf32>
    %26 = vector.shape_cast %25 : vector<384xf32> to vector<1x384xf32>
    %27 = vector.broadcast %22 : vector<1x1xf32> to vector<1x384xf32>
    %28 = arith.addf %26, %27 : vector<1x384xf32>
    %29 = arith.negf %28 : vector<1x384xf32>
    %30 = math.exp %29 : vector<1x384xf32>
    %cst_12 = arith.constant 1.000000e+00 : f32
    %31 = vector.broadcast %cst_12 : f32 to vector<1x384xf32>
    %32 = arith.addf %31, %30 : vector<1x384xf32>
    %33 = arith.divf %31, %32 : vector<1x384xf32>
    %c0_13 = arith.constant 0 : index
    %c0_14 = arith.constant 0 : index
    %34 = vector.load %arg3[%c0_13, %c0_14] : memref<1x384xf32, #tpu.memory_space<vmem>>, vector<1x384xf32>
    tpu.vector_store %arg3[%c0_13, %c0_14], %33 {strides = array<i32>} : memref<1x384xf32, #tpu.memory_space<vmem>>, vector<1x384xf32>,
    return
  }
  func.func @transform_0(%arg0: i32) -> (i32, i32) {
    %c0_i32 = arith.constant 0 : i32
    %c0_i32_0 = arith.constant 0 : i32
    return %c0_i32, %arg0 : i32, i32
  }
  func.func @transform_1(%arg0: i32) -> (i32, i32, i32) {
    %c0_i32 = arith.constant 0 : i32
    %c0_i32_0 = arith.constant 0 : i32
    %c0_i32_1 = arith.constant 0 : i32
    %c0_i32_2 = arith.constant 0 : i32
    return %c0_i32, %c0_i32_0, %c0_i32_1 : i32, i32, i32
  }
  func.func @transform_2(%arg0: i32) -> (i32, i32) {
    %c0_i32 = arith.constant 0 : i32
    %c0_i32_0 = arith.constant 0 : i32
    return %c0_i32, %arg0 : i32, i32
  }
}

</mosaic_0001>

<bundles_post_ra>
// kernel: tpu_custom_call.1
= control target key start
LH: loop header
LB: loop body
LE: loop exit
PB: predicated region body
PF: predicated region fallthrough
CT: control target
= control target key end

     0   :  { %7 = vsyncpa [#allocation3], 0  ;;  %s721_s0 = inlined_call_operand.hbm [shape: f32[24,384], index: 0, kind: input, shape index: {}]   ;;  %s722_s1 = inlined_call_operand.hbm [shape: f32[3,32,33], index: 1, kind: input, shape index: {}]   ;;  %s723_s2 = inlined_call_operand.hbm [shape: f32[1,384], index: 2, kind: output, shape index: {}]  }
   0x1   :  { %8 = vsyncpa [#allocation6], 0 }
   0x2   :  { %9 = vsyncpa [#allocation4], 0  ;;  %s14_s11 = sshll.u32 %s721_s0, 4  ;;  %s619_s12 = smov [#allocation2]   ;;  %s15_s11 = int_to_ptr.hbm [resolvable:$true] %s14_s11 }
   0x3   :  { %s16_s13 = sshll.u32 %s619_s12, 4  ;;  %s27_s16 = sshll.u32 %s722_s1, 4  ;;  %s17_s13 = int_to_ptr.vmem [resolvable:$true] %s16_s13  ;;  %s28_s16 = int_to_ptr.hbm [resolvable:$true] %s27_s16 }
   0x4   :  { %s620_s17 = smov 384   ;;  %s621_s18 = smov 24  }
   0x5   :  { %22 = dma.hbm_to_vmem [thread:$0]  %s15_s11, 1152, %s17_s13, [#allocation3], %s620_s17, %s620_s17, %s621_s18  }
   0x6   :  { %s622_s19 = smov [#allocation5]   ;;  %s623_s21 = smov 128  }
   0x7   :  { %s29_s20 = sshll.u32 %s622_s19, 4  ;;  %s624_s22 = smov 8   ;;  %s30_s20 = int_to_ptr.vmem [resolvable:$true] %s29_s20 }
   0x8   :  { %35 = dma.hbm_to_vmem [thread:$0]  %s28_s16, 1536, %s30_s20, [#allocation6], %s623_s21, %s623_s21, %s624_s22  }
   0x9   :  { %613 = dma.done.wait [#allocation3], 1152  }
   0xa   :  { %614 = vsyncadd [#allocation3], 4294966144 }
   0xb   :  { %615 = dma.done.wait [#allocation6], 1536  }
   0xc   :  { %616 = vsyncadd [#allocation6], 4294965760  ;;  %v625_v0 = vmov 32   ;;  %v50_v1 = vld [vmem:[#allocation2 + $0x30] sm:$0xff]  ;;  %v51_v2 = vld [vmem:[#allocation2 + $0x38] sm:$0xff]  ;;  %vm77_vm0 = vcmask 195584  }
   0xd   :  { %521 = vset.pattern.permute.xlu0 %v625_v0  ;;  %522 = vset.pattern.permute.xlu1 %v625_v0  ;;  %v47_v3 = vld [vmem:[#allocation2 + $0x18] sm:$0xff]  ;;  %v48_v4 = vld [vmem:[#allocation2 + $0x20] sm:$0xff]  ;;  %v45_v6 = vld [vmem:[#allocation2 + $0x8] sm:$0xff]  ;;  %v626_v48 = vmov 0   ;;  %vm210_vm1 = vcmask 261120   ;;  %vm451_vm14 = vcmask 1040384  }
   0xe   :  { %523 = vset.pattern.permute.xlu2 %v625_v0  ;;  %506 = vmatpush.msra.mxu2 %v50_v1  ;;  %v44_v5 = vld [vmem:[#allocation2] sm:$0xff]  ;;  %v55_v7 = vld [vmem:[#allocation5 + $0x10] sm:$0xff]  ;;  %v53_v10 = vld [vmem:[#allocation5] sm:$0xff]  ;;  %s627_s0 = smov [#allocation7]   ;;  %s468_s25 = sshll.u32 %s723_s2, 4  ;;  %vm453_vm15 = vcmask 1041408   ;;  %s469_s25 = int_to_ptr.hbm [resolvable:$true] %s468_s25 }
   0xf   :  { %509 = vmatpush.msra.mxu3 %v51_v2  ;;  %99 = vmatpush.msra.mxu0 %v50_v1  ;;  %v56_v8 = vld [vmem:[#allocation5 + $0x18] sm:$0xff]  ;;  %v49_v11 = vld [vmem:[#allocation2 + $0x28] sm:$0xff]  ;;  %v46_v12 = vld [vmem:[#allocation2 + $0x10] sm:$0xff]  ;;  %s466_s1 = sshll.u32 %s627_s0, 4  ;;  %s467_s1 = int_to_ptr.vmem [resolvable:$true] %s466_s1 }
  0x10   :  { %128 = vmatpush.msra.mxu1 %v51_v2  ;;  %507 = vmatpush.msra.mxu2 %v47_v3  ;;  %v52_v9 = vld [vmem:[#allocation2 + $0x40] sm:$0xff]  ;;  %v54_v13 = vld [vmem:[#allocation5 + $0x8] sm:$0xff]  ;;  %v660_v14 = vld [vmem:[#allocation5 + $0x30] sm:$0xff] }
  0x11   :  { %510 = vmatpush.msra.mxu3 %v48_v4  ;;  %100 = vmatpush.msra.mxu0 %v47_v3  ;;  %v664_v15 = vld [vmem:[#allocation5 + $0x38] sm:$0xff]  ;;  %v670_v16 = vld [vmem:[#allocation5 + $0x20] sm:$0xff]  ;;  %v675_v18 = vld [vmem:[#allocation5 + $0x28] sm:$0xff] }
  0x12   :  { %129 = vmatpush.msra.mxu1 %v48_v4  ;;  %508 = vmatpush.msra.mxu2 %v44_v5  ;;  %v320_v46 = vld [vmem:[#allocation5 + $0x48] sm:$0xff]  ;;  %v321_v49 = vld [vmem:[#allocation5 + $0x50] sm:$0xff]  ;;  %v319_v52 = vld [vmem:[#allocation5 + $0x40] sm:$0xff] }
  0x13   :  { %511 = vmatpush.msra.mxu3 %v45_v6  ;;  %481 = vmatmul.msk.f32.vlgmr.msra.gmra.mxu2 %vm77_vm0, %v55_v7  ;;  %v322_v58 = vld [vmem:[#allocation5 + $0x58] sm:$0xff] }
  0x14   :  { %485 = vmatmul.msk.f32.vlgmr.msra.gmra.mxu3 %vm77_vm0, %v55_v7  ;;  %74 = vperm.xlu0 %521, %v56_v8  }
  0x15   :  { %101 = vmatpush.msra.mxu0 %v44_v5  ;;  %130 = vmatpush.msra.mxu1 %v45_v6 }
  0x16   :  { %157 = vmatpush.msrb.mxu2 %v52_v9  ;;  %479 = vmatmul.msk.f32.vlgmr.msra.gmra.mxu0 %vm77_vm0, %v53_v10 }
  0x17   :  { %483 = vmatmul.msk.f32.vlgmr.msra.gmra.mxu1 %vm77_vm0, %v53_v10  ;;  %64 = vperm.xlu1 %522, %v54_v13  }
  0x18   :  { %158 = vmatpush.msrb.mxu2 %v49_v11  ;;  %192 = vperm.xlu2 %523, %v670_v16  }
  0x1a   :  { %159 = vmatpush.msrb.mxu2 %v46_v12 }
  0x1b   :  { %482 = vmatmul.msk.f32.gmra.mxu2 %vm77_vm0, %v56_v8 }
  0x1c   :  { %486 = vmatmul.msk.f32.gmra.mxu3 %vm77_vm0, %v56_v8  ;;  %69 = vperm.xlu0 %521, %v55_v7  }
  0x1e   :  { %480 = vmatmul.msk.f32.gmra.mxu0 %vm77_vm0, %v54_v13 }
  0x1f   :  { %484 = vmatmul.msk.f32.gmra.mxu1 %vm77_vm0, %v54_v13  ;;  %59 = vperm.xlu1 %522, %v53_v10  }
  0x20   :  { %197 = vperm.xlu2 %523, %v675_v18  }
  0x23   :  { %487 = vmatmul.msk.f32.vlgmr.msrb.gmra.mxu2 %vm77_vm0, %v53_v10 }
  0x24   :  { %202 = vperm.xlu0 %521, %v660_v14  }
  0x27   :  { %207 = vperm.xlu1 %522, %v664_v15  }
  0x28   :  { %524 = vset.pattern.permute.xlu2 %v626_v48 }
  0x29   :  { %325 = vperm.xlu2 %524, %v319_v52  }
  0x2b   :  { %488 = vmatmul.msk.f32.gmra.mxu2 %vm77_vm0, %v54_v13 }
  0x2c   :  { %525 = vset.pattern.permute.xlu0 %v626_v48 }
  0x2d   :  { %330 = vperm.xlu0 %525, %v320_v46  }
  0x2f   :  { %526 = vset.pattern.permute.xlu1 %v626_v48 }
  0x30   :  { %335 = vperm.xlu1 %526, %v321_v49  }
  0x31   :  { %340 = vperm.xlu2 %524, %v322_v58  }
  0x33   :  { %489 = vmatmul.msk.f32.gmra.mxu2 %vm77_vm0, %v55_v7 }
  0x35   :  { %528 = vset.pattern.permute.xlu0 %v625_v0 }
  0x38   :  { %527 = vset.pattern.permute.xlu1 %v625_v0 }
  0x39   :  { %383 = vperm.xlu1 %527, %v319_v52  }
  0x3b   :  { %490 = vmatmul.msk.f32.gmra.mxu2 %vm77_vm0, %v56_v8 }
  0x72   :  { %v193_v63 = vpop.permute.xlu2 %192 }
  0x7a   :  { %v198_v3 = vpop.permute.xlu2 %197 }
  0x83   :  { %v326_v13 = vpop.permute.xlu2 %325 }
  0x86   :  { %v673_v17 = vpop.permute.xlu0 %74 }
  0x89   :  { %v65_v19 = vpop.permute.xlu1 %64 }
  0x8e   :  { %v70_v24 = vpop.permute.xlu0 %69 }
  0x91   :  { %v60_v28 = vpop.permute.xlu1 %59 }
  0x93   :  { %v103_v20 = vpop.f32.mrf.mxu0 }
  0x94   :  { %v132_v21 = vpop.f32.mrf.mxu1  ;;  %v104_v36 = vadd.f32 %v103_v20, %v60_v28 }
  0x95   :  { %v133_v40 = vadd.f32 %v132_v21, %v60_v28 }
  0x96   :  { %v109_v22 = vpop.f32.mrf.mxu2  ;;  %v173_v44 = vmax.f32 %v104_v36, 0.0  ;;  %v203_v4 = vpop.permute.xlu0 %202 }
  0x97   :  { %v138_v23 = vpop.f32.mrf.mxu3  ;;  %v110_v29 = vadd.f32 %v109_v22, %v70_v24  ;;  %v174_v45 = vmax.f32 %v133_v40, 0.0 }
  0x98   :  { %v139_v27 = vadd.f32 %v138_v23, %v70_v24 }
  0x99   :  { %v179_v41 = vmax.f32 %v110_v29, 0.0  ;;  %v707_v7 = vpop.permute.xlu1 %207  ;;  %v341_v29 = vpop.permute.xlu2 %340 }
  0x9a   :  { %v180_v37 = vmax.f32 %v139_v27, 0.0 }
  0x9b   :  { %v106_v25 = vpop.f32.mrf.mxu0 }
  0x9c   :  { %v135_v26 = vpop.f32.mrf.mxu1  ;;  %v107_v34 = vadd.f32 %v106_v25, %v65_v19 }
  0x9d   :  { %v136_v35 = vadd.f32 %v135_v26, %v65_v19 }
  0x9e   :  { %v112_v30 = vpop.f32.mrf.mxu2  ;;  %v176_v42 = vmax.f32 %v107_v34, 0.0 }
  0x9f   :  { %v141_v31 = vpop.f32.mrf.mxu3  ;;  %v113_v32 = vadd.f32 %v112_v30, %v673_v17  ;;  %v177_v43 = vmax.f32 %v136_v35, 0.0 }
  0xa0   :  { %v142_v33 = vadd.f32 %v141_v31, %v673_v17 }
  0xa1   :  { %v182_v38 = vmax.f32 %v113_v32, 0.0 }
  0xa2   :  { %v183_v39 = vmax.f32 %v142_v33, 0.0  ;;  %v336_v20 = vpop.permute.xlu1 %335 }
  0xa3   :  { %231 = vmatpush.msrb.mxu3 %v182_v38 }
  0xa4   :  { %260 = vmatpush.msrb.mxu0 %v183_v39 }
  0xa5   :  { %232 = vmatpush.msrb.mxu3 %v179_v41 }
  0xa6   :  { %261 = vmatpush.msrb.mxu0 %v180_v37  ;;  %v161_v47 = vpop.f32.mrf.mxu2 }
  0xa7   :  { %233 = vmatpush.msrb.mxu3 %v176_v42  ;;  %v162_v59 = vadd.f32 %v161_v47, %v60_v28 }
  0xa8   :  { %262 = vmatpush.msrb.mxu0 %v177_v43 }
  0xa9   :  { %234 = vmatpush.msrb.mxu3 %v173_v44  ;;  %v175_v62 = vmax.f32 %v162_v59, 0.0 }
  0xaa   :  { %263 = vmatpush.msrb.mxu0 %v174_v45  ;;  %491 = vmatmul.msk.f32.vlgmr.msrb.gmra.mxu3 %vm210_vm1, %v670_v16 }
  0xab   :  { %495 = vmatmul.msk.f32.vlgmr.msrb.gmra.mxu0 %vm210_vm1, %v670_v16 }
  0xae   :  { %v164_v50 = vpop.f32.mrf.mxu2 }
  0xaf   :  { %v165_v56 = vadd.f32 %v164_v50, %v65_v19 }
  0xb1   :  { %v178_v61 = vmax.f32 %v165_v56, 0.0 }
  0xb2   :  { %492 = vmatmul.msk.f32.gmra.mxu3 %vm210_vm1, %v675_v18 }
  0xb3   :  { %496 = vmatmul.msk.f32.gmra.mxu0 %vm210_vm1, %v675_v18 }
  0xb6   :  { %v167_v51 = vpop.f32.mrf.mxu2 }
  0xb7   :  { %v168_v54 = vadd.f32 %v167_v51, %v70_v24 }
  0xb9   :  { %v181_v60 = vmax.f32 %v168_v54, 0.0 }
  0xba   :  { %493 = vmatmul.msk.f32.gmra.mxu3 %vm210_vm1, %v660_v14 }
  0xbb   :  { %497 = vmatmul.msk.f32.gmra.mxu0 %vm210_vm1, %v660_v14 }
  0xbe   :  { %v170_v53 = vpop.f32.mrf.mxu2 }
  0xbf   :  { %v171_v55 = vadd.f32 %v170_v53, %v673_v17 }
  0xc1   :  { %v184_v57 = vmax.f32 %v171_v55, 0.0 }
  0xc2   :  { %494 = vmatmul.msk.f32.gmra.mxu3 %vm210_vm1, %v664_v15 }
  0xc3   :  { %498 = vmatmul.msk.f32.gmra.mxu0 %vm210_vm1, %v664_v15  ;;  %289 = vmatpush.msrb.mxu1 %v184_v57 }
  0xc5   :  { %290 = vmatpush.msrb.mxu1 %v181_v60 }
  0xc7   :  { %291 = vmatpush.msrb.mxu1 %v178_v61 }
  0xc9   :  { %292 = vmatpush.msrb.mxu1 %v175_v62 }
  0xca   :  { %499 = vmatmul.msk.f32.vlgmr.msrb.gmra.mxu1 %vm210_vm1, %v670_v16 }
  0xd2   :  { %500 = vmatmul.msk.f32.gmra.mxu1 %vm210_vm1, %v675_v18 }
  0xda   :  { %501 = vmatmul.msk.f32.gmra.mxu1 %vm210_vm1, %v660_v14  ;;  %v331_v14 = vpop.permute.xlu0 %330 }
  0xe2   :  { %502 = vmatmul.msk.f32.gmra.mxu1 %vm210_vm1, %v664_v15 }
 0x128   :  { %v265_v0 = vpop.f32.mrf.mxu0 }
 0x129   :  { %v266_v5 = vadd.f32 %v265_v0, %v193_v63  ;;  %v384_v0 = vpop.permute.xlu1 %383 }
 0x12b   :  { %v307_v10 = vmax.f32 %v266_v5, 0.0 }
 0x12d   :  { %v236_v1 = vpop.f32.mrf.mxu3  ;;  %v344_v18 = vmul.f32 %v326_v13, %v307_v10 }
 0x12e   :  { %v237_v16 = vadd.f32 %v236_v1, %v193_v63 }
 0x130   :  { %v268_v2 = vpop.f32.mrf.mxu0  ;;  %v306_v22 = vmax.f32 %v237_v16, 0.0 }
 0x131   :  { %v269_v6 = vadd.f32 %v268_v2, %v198_v3 }
 0x132   :  { %v343_v30 = vmul.f32 %v326_v13, %v306_v22 }
 0x133   :  { %v310_v12 = vmax.f32 %v269_v6, 0.0 }
 0x135   :  { %v239_v8 = vpop.f32.mrf.mxu3  ;;  %v347_v19 = vmul.f32 %v331_v14, %v310_v12 }
 0x136   :  { %v240_v17 = vadd.f32 %v239_v8, %v198_v3 }
 0x137   :  { %v364_v26 = vadd.f32 %v347_v19, %v344_v18 }
 0x138   :  { %v271_v9 = vpop.f32.mrf.mxu0  ;;  %v309_v23 = vmax.f32 %v240_v17, 0.0 }
 0x139   :  { %v272_v11 = vadd.f32 %v271_v9, %v203_v4 }
 0x13a   :  { %v346_v31 = vmul.f32 %v331_v14, %v309_v23 }
 0x13b   :  { %v313_v15 = vmax.f32 %v272_v11, 0.0 }
 0x13c   :  { %v355_v37 = vadd.f32 %v346_v31, %v343_v30 }
 0x13d   :  { %v242_v21 = vpop.f32.mrf.mxu3  ;;  %v350_v27 = vmul.f32 %v336_v20, %v313_v15 }
 0x13e   :  { %v243_v24 = vadd.f32 %v242_v21, %v203_v4 }
 0x13f   :  { %v365_v34 = vadd.f32 %v364_v26, %v350_v27 }
 0x140   :  { %v274_v25 = vpop.f32.mrf.mxu0  ;;  %v312_v32 = vmax.f32 %v243_v24, 0.0 }
 0x141   :  { %v275_v28 = vadd.f32 %v274_v25, %v707_v7 }
 0x142   :  { %v349_v38 = vmul.f32 %v336_v20, %v312_v32 }
 0x143   :  { %v316_v33 = vmax.f32 %v275_v28, 0.0 }
 0x144   :  { %v356_v44 = vadd.f32 %v355_v37, %v349_v38 }
 0x145   :  { %v353_v35 = vmul.f32 %v341_v29, %v316_v33  ;;  %v245_v36 = vpop.f32.mrf.mxu3 }
 0x146   :  { %v246_v40 = vadd.f32 %v245_v36, %v707_v7 }
 0x147   :  { %v366_v39 = vadd.f32 %v365_v34, %v353_v35  ;;  %v294_v41 = vpop.f32.mrf.mxu1 }
 0x148   :  { %v315_v43 = vmax.f32 %v246_v40, 0.0  ;;  %v295_v59 = vadd.f32 %v294_v41, %v193_v63 }
 0x149   :  { %v367_v42 = vrot.slane %v366_v39, 4 }
 0x14a   :  { %v352_v46 = vmul.f32 %v341_v29, %v315_v43  ;;  %v308_v2 = vmax.f32 %v295_v59, 0.0 }
 0x14b   :  { %v368_v45 = vadd.f32 %v367_v42, %v366_v39 }
 0x14c   :  { %v357_v47 = vadd.f32 %v356_v44, %v352_v46  ;;  %v345_v11 = vmul.f32 %v326_v13, %v308_v2 }
 0x14d   :  { %v369_v48 = vrot.slane %v368_v45, 2 }
 0x14e   :  { %v358_v49 = vrot.slane %v357_v47, 4 }
 0x14f   :  { %v297_v50 = vpop.f32.mrf.mxu1  ;;  %v370_v52 = vadd.f32 %v369_v48, %v368_v45 }
 0x150   :  { %v359_v51 = vadd.f32 %v358_v49, %v357_v47  ;;  %v298_v56 = vadd.f32 %v297_v50, %v198_v3 }
 0x151   :  { %v371_v55 = vrot.slane %v370_v52, 1 }
 0x152   :  { %v360_v53 = vrot.slane %v359_v51, 2  ;;  %v311_v62 = vmax.f32 %v298_v56, 0.0 }
 0x153   :  { %v372_v61 = vadd.f32 %v371_v55, %v370_v52 }
 0x154   :  { %v361_v54 = vadd.f32 %v360_v53, %v359_v51  ;;  %v348_v8 = vmul.f32 %v331_v14, %v311_v62 }
 0x155   :  { %v387_v6 = vadd.f32 %v384_v0, %v372_v61 }
 0x156   :  { %v362_v57 = vrot.slane %v361_v54, 1  ;;  %v373_v3 = vadd.f32 %v348_v8, %v345_v11 }
 0x157   :  { %v300_v58 = vpop.f32.mrf.mxu1  ;;  %v504_v17 = vmul.f32 -1.442695, %v387_v6 }
 0x158   :  { %v301_v60 = vadd.f32 %v300_v58, %v203_v4  ;;  %v363_v1 = vadd.f32 %v362_v57, %v361_v54  ;;  %v456_v58 = vlaneseq }
 0x159   :  { %529 = vpow2.f32 %v504_v17 }
 0x15a   :  { %v314_v5 = vmax.f32 %v301_v60, 0.0  ;;  %v386_v9 = vadd.f32 %v384_v0, %v363_v1  ;;  %vm458_vm0 = vcmp.lt.s32.totalorder %v456_v58, 384 }
 0x15c   :  { %v351_v12 = vmul.f32 %v336_v20, %v314_v5  ;;  %v503_v18 = vmul.f32 -1.442695, %v386_v9 }
 0x15e   :  { %v374_v63 = vadd.f32 %v373_v3, %v351_v12  ;;  %531 = vpow2.f32 %v503_v18 }
 0x15f   :  { %v303_v10 = vpop.f32.mrf.mxu1  ;;  %v530_v23 = vpop.eup %529 }
 0x160   :  { %v304_v16 = vadd.f32 %v303_v10, %v707_v7  ;;  %v399_v25 = vadd.f32 1.0, %v530_v23 }
 0x162   :  { %v317_v15 = vmax.f32 %v304_v16, 0.0  ;;  %533 = vrcp.f32 %v399_v25  ;;  %vm421_vm3 = vweird.f32 %v399_v25  ;;  %v427_v41 = vand.u32 2147483648, %v399_v25 }
 0x163   :  { %v425_v45 = vand.u32 2147483647, %v399_v25 }
 0x164   :  { %v354_v4 = vmul.f32 %v341_v29, %v317_v15  ;;  %v532_v14 = vpop.eup %531  ;;  %v428_v51 = vor.u32 1.1754944e-38, %v427_v41 }
 0x165   :  { %v398_v13 = vadd.f32 1.0, %v532_v14  ;;  %vm426_vm9 = vcmp.eq.f32.partialorder %v425_v45, 8.507059e+37 }
 0x166   :  { %v375_v19 = vadd.f32 %v374_v63, %v354_v4 }
 0x167   :  { %535 = vrcp.f32 %v398_v13  ;;  %v412_v44 = vand.u32 2147483648, %v398_v13  ;;  %vm406_vm6 = vweird.f32 %v398_v13  ;;  %v410_v47 = vand.u32 2147483647, %v398_v13 }
 0x168   :  { %v376_v21 = vrot.slane %v375_v19, 4  ;;  %v534_v30 = vpop.eup %533 }
 0x169   :  { %v417_v31 = vmul.f32 %v534_v30, %v399_v25  ;;  %vm422_vm2 = vweird.f32 %v534_v30  ;;  %v413_v55 = vor.u32 1.1754944e-38, %v412_v44  ;;  %vm411_vm11 = vcmp.eq.f32.partialorder %v410_v47, 8.507059e+37 }
 0x16a   :  { %v377_v22 = vadd.f32 %v376_v21, %v375_v19  ;;  %vm423_vm5 = vmor %vm421_vm3, %vm422_vm2 }
 0x16b   :  { %v418_v34 = vsub.f32 1.0, %v417_v31 }
 0x16c   :  { %v378_v24 = vrot.slane %v377_v22, 2 }
 0x16d   :  { %v536_v29 = vpop.eup %535  ;;  %v419_v37 = vmul.f32 %v534_v30, %v418_v34 }
 0x16e   :  { %v379_v26 = vadd.f32 %v378_v24, %v377_v22  ;;  %v402_v32 = vmul.f32 %v536_v29, %v398_v13  ;;  %vm407_vm4 = vweird.f32 %v536_v29 }
 0x16f   :  { %v420_v40 = vadd.f32 %v534_v30, %v419_v37  ;;  %vm712_vm7 = vmor %vm406_vm6, %vm407_vm4 }
 0x170   :  { %v380_v20 = vrot.slane %v379_v26, 1  ;;  %v403_v36 = vsub.f32 1.0, %v402_v32 }
 0x171   :  { %v424_v48 = vsel %vm423_vm5, %v534_v30, %v420_v40 }
 0x172   :  { %v381_v7 = vadd.f32 %v380_v20, %v379_v26  ;;  %v404_v38 = vmul.f32 %v536_v29, %v403_v36  ;;  %v429_v56 = vsel %vm426_vm9, %v428_v51, %v424_v48 }
 0x174   :  { %v388_v27 = vadd.f32 %v384_v0, %v381_v7  ;;  %v405_v43 = vadd.f32 %v536_v29, %v404_v38  ;;  %v449_v0 = vrot.slane %v429_v56, 7 }
 0x176   :  { %v505_v28 = vmul.f32 -1.442695, %v388_v27  ;;  %v409_v54 = vsel %vm712_vm7, %v536_v29, %v405_v43 }
 0x177   :  { %v414_v60 = vsel %vm411_vm11, %v413_v55, %v409_v54 }
 0x178   :  { %537 = vpow2.f32 %v505_v28  ;;  %v452_v2 = vsel %vm451_vm14, %v414_v60, %v449_v0 }
 0x17e   :  { %v538_v33 = vpop.eup %537 }
 0x17f   :  { %v400_v35 = vadd.f32 1.0, %v538_v33 }
 0x181   :  { %539 = vrcp.f32 %v400_v35  ;;  %v442_v49 = vand.u32 2147483648, %v400_v35  ;;  %v440_v53 = vand.u32 2147483647, %v400_v35  ;;  %vm436_vm10 = vweird.f32 %v400_v35 }
 0x183   :  { %v443_v59 = vor.u32 1.1754944e-38, %v442_v49  ;;  %vm441_vm13 = vcmp.eq.f32.partialorder %v440_v53, 8.507059e+37 }
 0x187   :  { %v540_v39 = vpop.eup %539 }
 0x188   :  { %v432_v42 = vmul.f32 %v540_v39, %v400_v35  ;;  %vm437_vm8 = vweird.f32 %v540_v39 }
 0x189   :  { %vm438_vm12 = vmor %vm436_vm10, %vm437_vm8 }
 0x18a   :  { %v433_v46 = vsub.f32 1.0, %v432_v42 }
 0x18c   :  { %v434_v52 = vmul.f32 %v540_v39, %v433_v46 }
 0x18e   :  { %v435_v57 = vadd.f32 %v540_v39, %v434_v52 }
 0x190   :  { %v439_v61 = vsel %vm438_vm12, %v540_v39, %v435_v57 }
 0x191   :  { %v444_v62 = vsel %vm441_vm13, %v443_v59, %v439_v61 }
 0x192   :  { %v450_v1 = vrot.slane %v444_v62, 6 }
 0x194   :  { %v454_v5 = vsel %vm453_vm15, %v452_v2, %v450_v1 }
 0x195   :  { %460 = vst.msk [vmem:[#allocation7] sm:$0x7] %vm458_vm0, %v454_v5 }
 0x196   :  { %471 = dma.vmem_to_hbm [thread:$0]  %s467_s1, 48, %s469_s25, [#allocation4]  }
 0x197   :  { %617 = dma.done.wait [#allocation4], 48  }
 0x198   :  { %618 = vsyncadd [#allocation4], 4294967248 }
 0x199   :  { %476 = vsyncpa [#allocation3], 1 }
 0x19a   :  { %477 = vsyncpa [#allocation6], 1 }
 0x19b   :  { %478 = vsyncpa [#allocation4], 1 }

</bundles_post_ra>
